<compile_context>
chip_gen: v7x
topology: tpu7x:2x2x1
jax: 0.10.0
libtpu: 0.0.40
codegen_flags: <defaults>
</compile_context>

<pallas_src>
import math

import jax
import jax.numpy as jnp
from jax.experimental import pallas as pl
from jax.experimental.pallas import tpu as pltpu


_LANE_CANDIDATES = (4096, 2048, 1024, 512, 384, 256, 128)
_TARGET_TILE_BYTES = 2 * 1024 * 1024  # ~2 MiB of f32 per tile


def _real_copy_kernel(x_ref, o_ref):
    # x_ref / o_ref: (TILE_R, LANES) float32 tiles of the real plane.
    o_ref[...] = x_ref[...]


def _plan_tiling(n):
    """Pick a lane-dense (rows, lanes, tile_rows) factorization of n elements."""
    lanes = None
    for cand in _LANE_CANDIDATES:
        if n > 0 and n % cand == 0:
            lanes = cand
            break
    if lanes is None:
        return None
    rows = n // lanes
    # Rows per tile: ~2 MiB of f32, multiple of 8 (sublane tiling); if the whole
    # row extent fits in one tile, use the full extent (always a legal block).
    target_rows = max(8, (_TARGET_TILE_BYTES // (4 * lanes)) // 8 * 8)
    tile_rows = rows if rows <= target_rows else target_rows
    return rows, lanes, tile_rows


def real_pallas(x: jax.Array) -> jax.Array:
    """Equivalent of torch `x.real`."""
    if not jnp.issubdtype(x.dtype, jnp.complexfloating):
        # x.real of a real tensor is the tensor itself.
        return x
    if x.dtype != jnp.complex64:
        # TODO(synk): no f64 Pallas TPU path for complex128; let XLA handle it.
        return jnp.real(x)

    shape = x.shape
    n = math.prod(shape) if shape else 1

    plan = _plan_tiling(n)
    if plan is None:
        # Element count not a multiple of 128: no lane-dense tiling possible.
        return jnp.real(x)
    rows, lanes, tile_rows = plan

    # Pallas TPU has no complex dtype, so the complex->float split necessarily
    # happens in XLA.  Only the real plane is materialized (no imag-plane HBM
    # traffic), reshaped to a lane-dense (rows, lanes) slab for the kernel.
    # TODO(synk): if Mosaic ever accepts complex64 refs (or a safe bitcast of
    # complex storage), move the de-interleave into the kernel's DMA.
    re = jnp.real(x).reshape(rows, lanes)

    grid = (pl.cdiv(rows, tile_rows),)
    out = pl.pallas_call(
        _real_copy_kernel,
        out_shape=jax.ShapeDtypeStruct((rows, lanes), jnp.float32),
        grid=grid,
        in_specs=[pl.BlockSpec((tile_rows, lanes), lambda i: (i, 0))],
        out_specs=pl.BlockSpec((tile_rows, lanes), lambda i: (i, 0)),
        compiler_params=pltpu.CompilerParams(
            dimension_semantics=("parallel",),   # megacore sharding on v7x
            vmem_limit_bytes=32 * 1024 * 1024,   # headroom over ~8 MiB live buffers
        ),
        cost_estimate=pl.CostEstimate(
            flops=0, transcendentals=0, bytes_accessed=8 * n,  # 4B in + 4B out / elem
        ),
    )(re)

    return out.reshape(shape)


if __name__ == "__main__":
    key = jax.random.PRNGKey(0)
    k_re, k_im = jax.random.split(key)
    B, C, H, W = 2, 4, 16, 16

    re = jax.random.normal(k_re, (B, C, H, W), dtype=jnp.float32)
    im = jax.random.normal(k_im, (B, C, H, W), dtype=jnp.float32)
    x = jax.lax.complex(re, im)  # complex64

    y = jax.block_until_ready(real_pallas(x))

    y_ref = jnp.real(x)
    assert y.shape == (B, C, H, W), y.shape
    assert y.dtype == jnp.float32, y.dtype
    assert jnp.array_equal(y, y_ref), "mismatch vs jnp.real reference"

    print("KERNEL_OK")
</pallas_src>

<mosaic_0001>
module attributes {stable_mosaic.version = 11 : i64} {
  func.func @_real_copy_kernel(%arg0: i32, %arg1: memref<1x2048xf32, #tpu.memory_space<vmem>>, %arg2: memref<1x2048xf32, #tpu.memory_space<vmem>>) attributes {dimension_semantics = [#tpu.dimension_semantics<parallel>], iteration_bounds = array<i64: 1>, scalar_prefetch = 0 : i64, scratch_operands = 0 : i64, tpu.core_type = #tpu.core_type<tc>, window_params = [{transform_indices = @transform_0, window_bounds = array<i64: 1, 2048>}, {transform_indices = @transform_1, window_bounds = array<i64: 1, 2048>}]} {
    %c0 = arith.constant 0 : index
    %c0_0 = arith.constant 0 : index
    %0 = vector.load %arg1[%c0, %c0_0] : memref<1x2048xf32, #tpu.memory_space<vmem>>, vector<1x2048xf32>
    %c0_1 = arith.constant 0 : index
    %c0_2 = arith.constant 0 : index
    %1 = vector.load %arg2[%c0_1, %c0_2] : memref<1x2048xf32, #tpu.memory_space<vmem>>, vector<1x2048xf32>
    tpu.vector_store %arg2[%c0_1, %c0_2], %0 {strides = array<i32>} : memref<1x2048xf32, #tpu.memory_space<vmem>>, vector<1x2048xf32>,
    return
  }
  func.func @transform_0(%arg0: i32) -> (i32, i32) {
    %c0_i32 = arith.constant 0 : i32
    %c0_i32_0 = arith.constant 0 : i32
    return %arg0, %c0_i32 : i32, i32
  }
  func.func @transform_1(%arg0: i32) -> (i32, i32) {
    %c0_i32 = arith.constant 0 : i32
    %c0_i32_0 = arith.constant 0 : i32
    return %arg0, %c0_i32 : i32, i32
  }
}

</mosaic_0001>

<bundles_post_ra>
// kernel: tpu_custom_call.1
= control target key start
LH: loop header
LB: loop body
LE: loop exit
PB: predicated region body
PF: predicated region fallthrough
CT: control target
= control target key end

     0   :  { %6 = vsyncpa [#allocation3], 0  ;;  %s126_s0 = inlined_call_operand.hbm [shape: f32[1,2048], index: 0, kind: input, shape index: {}]   ;;  %s127_s1 = inlined_call_operand.hbm [shape: f32[1,2048], index: 1, kind: output, shape index: {}]  }
   0x1   :  { %7 = vsyncpa [#allocation4], 0  ;;  %s90_s6 = smov [#allocation2]   ;;  %s42_s10 = scalar_lea.hbm %s126_s0, 256 }
   0x2   :  { %s14_s7 = sshll.u32 %s90_s6, 4  ;;  %p43_p0 = scmp.ne.s32.totalorder %s126_s0, %s42_s10  ;;  %s15_s7 = int_to_ptr.vmem [resolvable:$true] %s14_s7 }
   0x3   :  { %p46_p1 = scmp.lt.u32.totalorder %s42_s10, %s126_s0 }
   0x5   :  { %p48_p2 = pnand %p46_p1, %p43_p0 }
   0x7   :  { %51 = shalt.err (!%p48_p2)
}
   0x8   :  { %s52_s15 = scalar_lea.vmem %s15_s7, 256  ;;  %p57_p4 = scmp.lt.s32.totalorder %s15_s7, %s15_s7 }
   0x9   :  { %p53_p3 = scmp.ne.s32.totalorder %s15_s7, %s52_s15  ;;  %p58_p5 = scmp.lt.s32.totalorder %s52_s15, %s52_s15 }
   0xb   :  { %p59_p6 = por %p58_p5, %p57_p4 }
   0xd   :  { %p60_p7 = pnand %p59_p6, %p53_p3 }
   0xf   :  { %63 = shalt.err (!%p60_p7)
}
  0x10   :  { %17 = dma.hbm_to_vmem [thread:$0]  %s126_s0, 256, %s15_s7, [#allocation3]  }
  0x11   :  { %86 = dma.done.wait [#allocation3], 256  }
  0x12   :  { %87 = vsyncadd [#allocation3], 4294967040  ;;  %s91_s18 = smov [#allocation5]   ;;  %v21_v0 = vld [vmem:[#allocation2] sm:$0xff]  ;;  %v22_v1 = vld [vmem:[#allocation2 + $0x8] sm:$0xff] }
  0x13   :  { %s31_s19 = sshll.u32 %s91_s18, 4  ;;  %23 = vst [vmem:[#allocation5] sm:$0xff] %v21_v0  ;;  %24 = vst [vmem:[#allocation5 + $0x8] sm:$0xff] %v22_v1  ;;  %s32_s19 = int_to_ptr.vmem [resolvable:$true] %s31_s19 }
  0x14   :  { %s64_s20 = scalar_lea.vmem %s32_s19, 256  ;;  %p69_p9 = scmp.lt.s32.totalorder %s32_s19, %s32_s19 }
  0x15   :  { %p65_p8 = scmp.ne.s32.totalorder %s32_s19, %s64_s20  ;;  %p70_p10 = scmp.lt.s32.totalorder %s64_s20, %s64_s20 }
  0x17   :  { %p71_p11 = por %p70_p10, %p69_p9 }
  0x19   :  { %p72_p12 = pnand %p71_p11, %p65_p8 }
  0x1b   :  { %75 = shalt.err (!%p72_p12)
}
  0x1c   :  { %s76_s0 = scalar_lea.hbm %s127_s1, 256 }
  0x1d   :  { %p77_p13 = scmp.ne.s32.totalorder %s127_s1, %s76_s0  ;;  %p80_p0 = scmp.lt.u32.totalorder %s76_s0, %s127_s1 }
  0x1f   :  { %p82_p1 = pnand %p80_p0, %p77_p13 }
  0x21   :  { %85 = shalt.err (!%p82_p1)
}
  0x22   :  { %34 = dma.vmem_to_hbm [thread:$0]  %s32_s19, 256, %s127_s1, [#allocation4]  }
  0x23   :  { %88 = dma.done.wait [#allocation4], 256  }
  0x24   :  { %89 = vsyncadd [#allocation4], 4294967040 }
  0x25   :  { %38 = vsyncpa [#allocation3], 1 }
  0x26   :  { %39 = vsyncpa [#allocation4], 1 }

</bundles_post_ra>
